<compile_context>
chip_gen: v7x
topology: tpu7x:2x2x1
jax: 0.10.0
libtpu: 0.0.40
codegen_flags: <defaults>
</compile_context>

<pallas_src>
import functools

import jax
import jax.numpy as jnp
from jax.experimental import pallas as pl
from jax.experimental.pallas import tpu as pltpu


# ---------------------------------------------------------------------------
# Tile helper
# ---------------------------------------------------------------------------

def _pick_tile(dim, pref, align):
    """Largest multiple of `align` that divides `dim` and is <= pref, else full dim."""
    if dim <= pref:
        return dim
    t = pref - (pref % align)
    while t >= align:
        if dim % t == 0:
            return t
        t -= align
    return dim


# ---------------------------------------------------------------------------
# LayerNorm (row-tiled)
# ---------------------------------------------------------------------------

def _layernorm_kernel(x_ref, g_ref, b_ref, o_ref, *, eps):
    x = x_ref[...].astype(jnp.float32)
    mean = jnp.mean(x, axis=-1, keepdims=True)
    var = jnp.mean((x - mean) ** 2, axis=-1, keepdims=True)   # biased, like torch
    y = (x - mean) * jax.lax.rsqrt(var + eps)
    o_ref[...] = (y * g_ref[...] + b_ref[...]).astype(o_ref.dtype)


def layernorm(x2d, gamma, beta, eps=1e-6):
    """x2d: [M, D] -> [M, D]"""
    M, D = x2d.shape
    tm = _pick_tile(M, 512, 8)
    g2 = gamma.reshape(1, D)
    b2 = beta.reshape(1, D)
    return pl.pallas_call(
        functools.partial(_layernorm_kernel, eps=eps),
        out_shape=jax.ShapeDtypeStruct((M, D), x2d.dtype),
        grid_spec=pltpu.PrefetchScalarGridSpec(
            num_scalar_prefetch=0,
            grid=(M // tm,),
            in_specs=[pl.BlockSpec((tm, D), lambda i: (i, 0)),
                      pl.BlockSpec((1, D), lambda i: (0, 0)),
                      pl.BlockSpec((1, D), lambda i: (0, 0))],
            out_specs=pl.BlockSpec((tm, D), lambda i: (i, 0)),
        ),
        compiler_params=pltpu.CompilerParams(dimension_semantics=("parallel",)),
    )(x2d, g2, b2)


# ---------------------------------------------------------------------------
# Linear: y = x @ W^T (+ b), W in torch [N, K] layout; tiled + pipelined
# ---------------------------------------------------------------------------

def _matmul_nt_kernel(x_ref, w_ref, o_ref, acc_ref):
    @pl.when(pl.program_id(2) == 0)
    def _():
        acc_ref[...] = jnp.zeros_like(acc_ref)
    # contract on the shared K axis (dim 1 of both) -> no in-kernel W transpose
    acc_ref[...] += jax.lax.dot_general(
        x_ref[...], w_ref[...], (((1,), (1,)), ((), ())),
        preferred_element_type=jnp.float32)
    @pl.when(pl.program_id(2) == pl.num_programs(2) - 1)
    def _():
        o_ref[...] = acc_ref[...].astype(o_ref.dtype)


def _matmul_nt_bias_kernel(x_ref, w_ref, b_ref, o_ref, acc_ref):
    @pl.when(pl.program_id(2) == 0)
    def _():
        acc_ref[...] = jnp.zeros_like(acc_ref)
    acc_ref[...] += jax.lax.dot_general(
        x_ref[...], w_ref[...], (((1,), (1,)), ((), ())),
        preferred_element_type=jnp.float32)
    @pl.when(pl.program_id(2) == pl.num_programs(2) - 1)
    def _():
        o_ref[...] = (acc_ref[...] + b_ref[...]).astype(o_ref.dtype)


def linear(x2d, w, b=None, *, tm_pref=256, tn_pref=256, tk_pref=512):
    """x2d: [M, K], w: [N, K] (torch nn.Linear layout), optional b: [N] -> [M, N]."""
    M, K = x2d.shape
    N = w.shape[0]
    tm = _pick_tile(M, tm_pref, 8)
    tn = _pick_tile(N, tn_pref, 128)
    tk = _pick_tile(K, tk_pref, 128)
    grid = (M // tm, N // tn, K // tk)

    x_spec = pl.BlockSpec((tm, tk), lambda i, j, kk: (i, kk))
    w_spec = pl.BlockSpec((tn, tk), lambda i, j, kk: (j, kk))
    o_spec = pl.BlockSpec((tm, tn), lambda i, j, kk: (i, j))
    scratch = [pltpu.VMEM((tm, tn), jnp.float32)]
    cp = pltpu.CompilerParams(
        dimension_semantics=("parallel", "parallel", "arbitrary"))

    if b is None:
        return pl.pallas_call(
            _matmul_nt_kernel,
            out_shape=jax.ShapeDtypeStruct((M, N), x2d.dtype),
            grid_spec=pltpu.PrefetchScalarGridSpec(
                num_scalar_prefetch=0, grid=grid,
                in_specs=[x_spec, w_spec], out_specs=o_spec,
                scratch_shapes=scratch),
            compiler_params=cp,
        )(x2d, w)

    b2 = b.reshape(1, N)
    b_spec = pl.BlockSpec((1, tn), lambda i, j, kk: (0, j))
    return pl.pallas_call(
        _matmul_nt_bias_kernel,
        out_shape=jax.ShapeDtypeStruct((M, N), x2d.dtype),
        grid_spec=pltpu.PrefetchScalarGridSpec(
            num_scalar_prefetch=0, grid=grid,
            in_specs=[x_spec, w_spec, b_spec], out_specs=o_spec,
            scratch_shapes=scratch),
        compiler_params=cp,
    )(x2d, w, b2)


# ---------------------------------------------------------------------------
# Multi-mask scaled dot-product attention
# ---------------------------------------------------------------------------

def _mp_attention_kernel(q_ref, k_ref, v_ref, m_ref, out_ref, attn_ref, s_ref,
                         *, temperature, n_head):
    # q_ref: [1,H,Lq,dk]  k_ref: [1,H,Lk,dk]  v_ref: [1,H,Lk,dv]
    # m_ref: [1,Lq,Lk] (additive mask, already (1-mask)*-10000)
    # out_ref: [1,1,Lq,H*dv]   attn_ref: [1,H,Lq,Lk] (pre-mask scores)
    # s_ref: VMEM scratch [H,Lq,Lk] — QK^T hoisted across the p axis.
    p_idx = pl.program_id(1)

    @pl.when(p_idx == 0)
    def _():
        inv_t = 1.0 / temperature
        for h in range(n_head):
            q = q_ref[0, h].astype(jnp.float32) * inv_t        # [Lq, dk]
            k = k_ref[0, h].astype(jnp.float32)                # [Lk, dk]
            s = jax.lax.dot_general(q, k, (((1,), (1,)), ((), ())),
                                    preferred_element_type=jnp.float32)
            s_ref[h] = s
            attn_ref[0, h] = s.astype(attn_ref.dtype)

    m = m_ref[0]                                               # [Lq, Lk]
    outs = []
    for h in range(n_head):
        s = s_ref[h] + m
        s = s - jnp.max(s, axis=-1, keepdims=True)
        e = jnp.exp(s)
        prob = e * pl.reciprocal(jnp.sum(e, axis=-1, keepdims=True), approx=False)
        v = v_ref[0, h].astype(jnp.float32)                    # [Lk, dv]
        outs.append(jnp.dot(prob, v, preferred_element_type=jnp.float32))
    # lane-dense merged-head write: [Lq, H*dv]
    out_ref[0, 0] = jnp.concatenate(outs, axis=-1).astype(out_ref.dtype)


def mp_attention(qp, kp, vp, ext_mask, temperature):
    """
    qp: [B,H,Lq,dk], kp: [B,H,Lk,dk], vp: [B,H,Lk,dv]
    ext_mask: [num_p,Lq,Lk] additive mask ((1-mask)*-10000)
    returns (out: [num_p,B,Lq,H*dv], attn: [B,H,Lq,Lk] pre-mask scores)
    """
    B, H, Lq, dk = qp.shape
    Lk = kp.shape[2]
    dv = vp.shape[3]
    num_p = ext_mask.shape[0]

    out_shapes = (
        jax.ShapeDtypeStruct((num_p, B, Lq, H * dv), qp.dtype),
        jax.ShapeDtypeStruct((B, H, Lq, Lk), jnp.float32),
    )
    return pl.pallas_call(
        functools.partial(_mp_attention_kernel, temperature=temperature, n_head=H),
        out_shape=out_shapes,
        grid_spec=pltpu.PrefetchScalarGridSpec(
            num_scalar_prefetch=0,
            grid=(B, num_p),   # p innermost "arbitrary": scores/attn stay VMEM-resident
            in_specs=[
                pl.BlockSpec((1, H, Lq, dk), lambda b, p: (b, 0, 0, 0)),
                pl.BlockSpec((1, H, Lk, dk), lambda b, p: (b, 0, 0, 0)),
                pl.BlockSpec((1, H, Lk, dv), lambda b, p: (b, 0, 0, 0)),
                pl.BlockSpec((1, Lq, Lk), lambda b, p: (p, 0, 0)),
            ],
            out_specs=[
                pl.BlockSpec((1, 1, Lq, H * dv), lambda b, p: (p, b, 0, 0)),
                pl.BlockSpec((1, H, Lq, Lk), lambda b, p: (b, 0, 0, 0)),
            ],
            scratch_shapes=[pltpu.VMEM((H, Lq, Lk), jnp.float32)],
        ),
        compiler_params=pltpu.CompilerParams(
            dimension_semantics=("parallel", "arbitrary")),
    )(qp, kp, vp, ext_mask)


# ---------------------------------------------------------------------------
# Module wrapper (parameters + forward)
# ---------------------------------------------------------------------------

def xavier_uniform(key, shape):
    fan_out, fan_in = shape
    limit = (6.0 / (fan_in + fan_out)) ** 0.5
    return jax.random.uniform(key, shape, jnp.float32, -limit, limit)


def init_params(key, n_head, d_model, d_k, d_v):
    ks = jax.random.split(key, 5)
    return {
        "w_qs": xavier_uniform(ks[0], (n_head * d_k, d_model)),
        "w_ks": xavier_uniform(ks[1], (n_head * d_k, d_model)),
        "w_vs": xavier_uniform(ks[2], (n_head * d_v, d_model)),
        "fc_w": xavier_uniform(ks[3], (d_model, n_head * d_v)),
        "fc_b": jax.random.uniform(ks[4], (d_model,), jnp.float32, -0.1, 0.1),
        "ln_g": jnp.ones((d_model,), jnp.float32),
        "ln_b": jnp.zeros((d_model,), jnp.float32),
    }


def mp_multi_head_attention(params, q, k, v, mask, *, n_head, d_k, d_v,
                            normalize_before=True):
    """Forward pass matching MPMultiHeadAttention (eval mode: dropout = identity)."""
    B, Lq, D = q.shape
    Lk = k.shape[1]
    Lv = v.shape[1]
    num_p = mask.shape[0]
    temperature = d_k ** 0.5

    residual = q

    qn = q
    if normalize_before:
        qn = layernorm(q.reshape(B * Lq, D), params["ln_g"], params["ln_b"]).reshape(B, Lq, D)

    # projections (no bias in torch module -> no-bias matmul kernel)
    qp = linear(qn.reshape(B * Lq, D), params["w_qs"]).reshape(B, Lq, n_head, d_k)
    kp = linear(k.reshape(B * Lk, D), params["w_ks"]).reshape(B, Lk, n_head, d_k)
    vp = linear(v.reshape(B * Lv, D), params["w_vs"]).reshape(B, Lv, n_head, d_v)

    # head-major layout for the attention kernel (leading-batch einsum pattern)
    qp = jnp.transpose(qp, (0, 2, 1, 3))   # [B, H, Lq, dk]
    kp = jnp.transpose(kp, (0, 2, 1, 3))
    vp = jnp.transpose(vp, (0, 2, 1, 3))

    # additive mask precomputed once (matches (1-mask)*-10000 in the torch module)
    ext_mask = ((1.0 - mask) * -10000.0).astype(jnp.float32)

    # attention output already lane-dense merged-head: [P, B, Lq, H*dv]
    out, attn = mp_attention(qp, kp, vp, ext_mask, temperature)

    # final fc (+bias) + residual; dropout = identity (eval mode)
    out = linear(out.reshape(num_p * B * Lq, n_head * d_v),
                 params["fc_w"], params["fc_b"]).reshape(num_p, B, Lq, D)
    out = out + residual[None, :, :, :]

    if not normalize_before:
        out = layernorm(out.reshape(num_p * B * Lq, D),
                        params["ln_g"], params["ln_b"]).reshape(num_p, B, Lq, D)
    return out, attn


# ---------------------------------------------------------------------------
# Pure-JAX reference (silent correctness check)
# ---------------------------------------------------------------------------

def _reference(params, q, k, v, mask, *, n_head, d_k, d_v):
    B, Lq, D = q.shape
    Lk = k.shape[1]
    num_p = mask.shape[0]
    temperature = d_k ** 0.5
    residual = q
    mean = jnp.mean(q, -1, keepdims=True)
    var = jnp.mean((q - mean) ** 2, -1, keepdims=True)
    qn = (q - mean) / jnp.sqrt(var + 1e-6) * params["ln_g"] + params["ln_b"]
    qp = (qn @ params["w_qs"].T).reshape(B, Lq, n_head, d_k).transpose(0, 2, 1, 3)
    kp = (k @ params["w_ks"].T).reshape(B, Lk, n_head, d_k).transpose(0, 2, 1, 3)
    vp = (v @ params["w_vs"].T).reshape(B, Lk, n_head, d_v).transpose(0, 2, 1, 3)
    attn = jnp.einsum("bhqd,bhkd->bhqk", qp / temperature, kp)
    ext = (1.0 - mask) * -10000.0                                    # [P, Lq, Lk]
    a = jax.nn.softmax(attn[None] + ext[:, None, None], axis=-1)     # [P,B,H,Lq,Lk]
    o = jnp.einsum("pbhqk,bhkd->pbhqd", a, vp)
    o = o.transpose(0, 1, 3, 2, 4).reshape(num_p, B, Lq, n_head * d_v)
    o = o @ params["fc_w"].T + params["fc_b"]
    o = o + residual[None]
    return o, attn


# ---------------------------------------------------------------------------

if __name__ == "__main__":
    B, L, d_model = 2, 8, 32
    n_head, d_k, d_v = 4, 8, 8
    num_p = 3

    key = jax.random.PRNGKey(0)
    kq, kk, kv, km, kp = jax.random.split(key, 5)

    q = jax.random.normal(kq, (B, L, d_model), jnp.float32)
    k = jax.random.normal(kk, (B, L, d_model), jnp.float32)
    v = jax.random.normal(kv, (B, L, d_model), jnp.float32)
    mask = (jax.random.uniform(km, (num_p, L, L)) > 0.3).astype(jnp.float32)

    params = init_params(kp, n_head, d_model, d_k, d_v)

    out, attn = mp_multi_head_attention(params, q, k, v, mask,
                                        n_head=n_head, d_k=d_k, d_v=d_v)
    out = jax.block_until_ready(out)
    attn = jax.block_until_ready(attn)

    # silent correctness check against pure-JAX reference
    ref_out, ref_attn = _reference(params, q, k, v, mask,
                                   n_head=n_head, d_k=d_k, d_v=d_v)
    assert out.shape == (num_p, B, L, d_model)
    assert attn.shape == (B, n_head, L, L)
    assert jnp.allclose(out, ref_out, atol=1e-4, rtol=1e-4)
    assert jnp.allclose(attn, ref_attn, atol=1e-4, rtol=1e-4)

    print("KERNEL_OK")
</pallas_src>

<mosaic_0001>
module attributes {stable_mosaic.version = 11 : i64} {
  func.func @_layernorm_kernel(%arg0: i32, %arg1: memref<16x32xf32, #tpu.memory_space<vmem>>, %arg2: memref<1x32xf32, #tpu.memory_space<vmem>>, %arg3: memref<1x32xf32, #tpu.memory_space<vmem>>, %arg4: memref<16x32xf32, #tpu.memory_space<vmem>>) attributes {dimension_semantics = [#tpu.dimension_semantics<parallel>], iteration_bounds = array<i64: 1>, scalar_prefetch = 0 : i64, scratch_operands = 0 : i64, tpu.core_type = #tpu.core_type<tc>, window_params = [{transform_indices = @transform_0, window_bounds = array<i64: 16, 32>}, {pipeline_mode = #tpu.pipeline_mode<synchronous>, transform_indices = @transform_1, window_bounds = array<i64: 1, 32>}, {pipeline_mode = #tpu.pipeline_mode<synchronous>, transform_indices = @transform_2, window_bounds = array<i64: 1, 32>}, {transform_indices = @transform_3, window_bounds = array<i64: 16, 32>}]} {
    %c0 = arith.constant 0 : index
    %c0_0 = arith.constant 0 : index
    %0 = vector.load %arg1[%c0, %c0_0] : memref<16x32xf32, #tpu.memory_space<vmem>>, vector<16x32xf32>
    %cst = arith.constant dense<0.000000e+00> : vector<16xf32>
    %1 = vector.multi_reduction <add>, %0, %cst [1] : vector<16x32xf32> to vector<16xf32>
    %2 = vector.shape_cast %1 : vector<16xf32> to vector<16x1xf32>
    %cst_1 = arith.constant 3.200000e+01 : f32
    %3 = vector.broadcast %cst_1 : f32 to vector<16x1xf32>
    %4 = arith.divf %2, %3 : vector<16x1xf32>
    %5 = vector.broadcast %4 : vector<16x1xf32> to vector<16x32xf32>
    %6 = arith.subf %0, %5 : vector<16x32xf32>
    %7 = arith.mulf %6, %6 : vector<16x32xf32>
    %cst_2 = arith.constant dense<0.000000e+00> : vector<16xf32>
    %8 = vector.multi_reduction <add>, %7, %cst_2 [1] : vector<16x32xf32> to vector<16xf32>
    %9 = vector.shape_cast %8 : vector<16xf32> to vector<16x1xf32>
    %cst_3 = arith.constant 3.200000e+01 : f32
    %10 = vector.broadcast %cst_3 : f32 to vector<16x1xf32>
    %11 = arith.divf %9, %10 : vector<16x1xf32>
    %12 = vector.broadcast %4 : vector<16x1xf32> to vector<16x32xf32>
    %13 = arith.subf %0, %12 : vector<16x32xf32>
    %cst_4 = arith.constant 9.99999997E-7 : f32
    %14 = vector.broadcast %cst_4 : f32 to vector<16x1xf32>
    %15 = arith.addf %11, %14 : vector<16x1xf32>
    %16 = math.rsqrt %15 : vector<16x1xf32>
    %17 = vector.broadcast %16 : vector<16x1xf32> to vector<16x32xf32>
    %18 = arith.mulf %13, %17 : vector<16x32xf32>
    %c0_5 = arith.constant 0 : index
    %c0_6 = arith.constant 0 : index
    %19 = vector.load %arg2[%c0_5, %c0_6] : memref<1x32xf32, #tpu.memory_space<vmem>>, vector<1x32xf32>
    %20 = vector.broadcast %19 : vector<1x32xf32> to vector<16x32xf32>
    %21 = arith.mulf %18, %20 : vector<16x32xf32>
    %c0_7 = arith.constant 0 : index
    %c0_8 = arith.constant 0 : index
    %22 = vector.load %arg3[%c0_7, %c0_8] : memref<1x32xf32, #tpu.memory_space<vmem>>, vector<1x32xf32>
    %23 = vector.broadcast %22 : vector<1x32xf32> to vector<16x32xf32>
    %24 = arith.addf %21, %23 : vector<16x32xf32>
    %c0_9 = arith.constant 0 : index
    %c0_10 = arith.constant 0 : index
    %25 = vector.load %arg4[%c0_9, %c0_10] : memref<16x32xf32, #tpu.memory_space<vmem>>, vector<16x32xf32>
    tpu.vector_store %arg4[%c0_9, %c0_10], %24 {strides = array<i32>} : memref<16x32xf32, #tpu.memory_space<vmem>>, vector<16x32xf32>,
    return
  }
  func.func @transform_0(%arg0: i32) -> (i32, i32) {
    %c0_i32 = arith.constant 0 : i32
    %c0_i32_0 = arith.constant 0 : i32
    return %arg0, %c0_i32 : i32, i32
  }
  func.func @transform_1(%arg0: i32) -> (i32, i32) {
    %c0_i32 = arith.constant 0 : i32
    %c0_i32_0 = arith.constant 0 : i32
    %c0_i32_1 = arith.constant 0 : i32
    return %c0_i32, %c0_i32_0 : i32, i32
  }
  func.func @transform_2(%arg0: i32) -> (i32, i32) {
    %c0_i32 = arith.constant 0 : i32
    %c0_i32_0 = arith.constant 0 : i32
    %c0_i32_1 = arith.constant 0 : i32
    return %c0_i32, %c0_i32_0 : i32, i32
  }
  func.func @transform_3(%arg0: i32) -> (i32, i32) {
    %c0_i32 = arith.constant 0 : i32
    %c0_i32_0 = arith.constant 0 : i32
    return %arg0, %c0_i32 : i32, i32
  }
}

</mosaic_0001>

<bundles_post_ra>
// kernel: tpu_custom_call.1
= control target key start
LH: loop header
LB: loop body
LE: loop exit
PB: predicated region body
PF: predicated region fallthrough
CT: control target
= control target key end

     0   :  { %8 = vsyncpa [#allocation3], 0  ;;  %s220_s0 = inlined_call_operand.hbm [shape: f32[16,32], index: 0, kind: input, shape index: {}]   ;;  %s221_s1 = inlined_call_operand.vmem [shape: f32[1,32], index: 1, kind: input, shape index: {}]   ;;  %s222_s2 = inlined_call_operand.vmem [shape: f32[1,32], index: 2, kind: input, shape index: {}]   ;;  %s223_s3 = inlined_call_operand.hbm [shape: f32[16,32], index: 3, kind: output, shape index: {}]  }
   0x1   :  { %9 = vsyncpa [#allocation4], 0  ;;  %s154_s12 = smov [#allocation2]   ;;  %s106_s16 = scalar_lea.hbm %s220_s0, 256 }
   0x2   :  { %s15_s13 = sshll.u32 %s154_s12, 4  ;;  %p107_p0 = scmp.ne.s32.totalorder %s220_s0, %s106_s16  ;;  %s16_s13 = int_to_ptr.vmem [resolvable:$true] %s15_s13 }
   0x3   :  { %p110_p1 = scmp.lt.u32.totalorder %s106_s16, %s220_s0 }
   0x5   :  { %p112_p2 = pnand %p110_p1, %p107_p0 }
   0x7   :  { %115 = shalt.err (!%p112_p2)
}
   0x8   :  { %s116_s21 = scalar_lea.vmem %s16_s13, 256  ;;  %p121_p4 = scmp.lt.s32.totalorder %s16_s13, %s16_s13 }
   0x9   :  { %p117_p3 = scmp.ne.s32.totalorder %s16_s13, %s116_s21  ;;  %p122_p5 = scmp.lt.s32.totalorder %s116_s21, %s116_s21 }
   0xb   :  { %p123_p6 = por %p122_p5, %p121_p4 }
   0xd   :  { %p124_p7 = pnand %p123_p6, %p117_p3 }
   0xf   :  { %127 = shalt.err (!%p124_p7)
}
  0x10   :  { %s155_s22 = smov 128   ;;  %s156_s23 = smov 8  }
  0x11   :  { %21 = dma.hbm_to_vmem [thread:$0]  %s220_s0, 256, %s16_s13, [#allocation3], %s155_s22, %s155_s22, %s156_s23  }
  0x12   :  { %150 = dma.done.wait [#allocation3], 256  }
  0x13   :  { %151 = vsyncadd [#allocation3], 4294967040  ;;  %vm31_vm0 = vcmask 261120   ;;  %v29_v0 = vld [vmem:[#allocation2] sm:$0xff]  ;;  %v30_v1 = vld [vmem:[#allocation2 + $0x8] sm:$0xff]  ;;  %s157_s29 = smov [#allocation5]  }
  0x14   :  { %v32_v2 = vsel %vm31_vm0, %v29_v0, 0.0  ;;  %v35_v3 = vsel %vm31_vm0, %v30_v1, 0.0  ;;  %v96_v21 = vld [vmem:[%s221_s1] ss:$0 sm:$0xff]  ;;  %s84_s30 = sshll.u32 %s157_s29, 4  ;;  %s85_s30 = int_to_ptr.vmem [resolvable:$true] %s84_s30 }
  0x15   :  { %33 = vadd.xlane.f32.xlu0 %v32_v2  ;;  %v97_v23 = vld [vmem:[%s222_s2] ss:$0 sm:$0xff]  ;;  %s128_s4 = scalar_lea.vmem %s85_s30, 256  ;;  %p133_p9 = scmp.lt.s32.totalorder %s85_s30, %s85_s30 }
  0x16   :  { %p129_p8 = scmp.ne.s32.totalorder %s85_s30, %s128_s4  ;;  %p134_p10 = scmp.lt.s32.totalorder %s128_s4, %s128_s4 }
  0x18   :  { %p135_p11 = por %p134_p10, %p133_p9 }
  0x19   :  { %36 = vadd.xlane.f32.xlu0 %v35_v3 }
  0x1a   :  { %p136_p12 = pnand %p135_p11, %p129_p8 }
  0xa2   :  { %v34_v4 = vpop.xlane.xlu0 %33 }
  0xa3   :  { %v39_v5 = vmul.f32 0.03125, %v34_v4 }
  0xa5   :  { %v41_v6 = vsub.f32 %v29_v0, %v39_v5 }
  0xa6   :  { %v37_v7 = vpop.xlane.xlu0 %36 }
  0xa7   :  { %v40_v8 = vmul.f32 0.03125, %v37_v7  ;;  %v43_v9 = vmul.f32 %v41_v6, %v41_v6 }
  0xa9   :  { %v42_v10 = vsub.f32 %v30_v1, %v40_v8  ;;  %v45_v11 = vsel %vm31_vm0, %v43_v9, 0.0 }
  0xaa   :  { %46 = vadd.xlane.f32.xlu1 %v45_v11 }
  0xab   :  { %v44_v12 = vmul.f32 %v42_v10, %v42_v10 }
  0xad   :  { %v48_v13 = vsel %vm31_vm0, %v44_v12, 0.0 }
  0xae   :  { %49 = vadd.xlane.f32.xlu1 %v48_v13 }
 0x137   :  { %v47_v14 = vpop.xlane.xlu1 %46 }
 0x138   :  { %v51_v15 = vmul.f32 0.03125, %v47_v14 }
 0x13a   :  { %v53_v16 = vadd.f32 1e-06, %v51_v15 }
 0x13b   :  { %v50_v17 = vpop.xlane.xlu1 %49 }
 0x13c   :  { %102 = vrsqrt.f32 %v53_v16  ;;  %v52_v18 = vmul.f32 0.03125, %v50_v17 }
 0x13e   :  { %v54_v19 = vadd.f32 1e-06, %v52_v18 }
 0x140   :  { %104 = vrsqrt.f32 %v54_v19 }
 0x146   :  { %v103_v20 = vpop.eup %102 }
 0x147   :  { %v57_v22 = vmul.f32 %v103_v20, %v41_v6 }
 0x149   :  { %v66_v24 = vmul.f32 %v96_v21, %v57_v22 }
 0x14a   :  { %v105_v25 = vpop.eup %104 }
 0x14b   :  { %v58_v26 = vmul.f32 %v105_v25, %v42_v10  ;;  %v75_v27 = vadd.f32 %v97_v23, %v66_v24 }
 0x14d   :  { %v67_v28 = vmul.f32 %v96_v21, %v58_v26  ;;  %77 = vst.msk [vmem:[#allocation5] sm:$0xff] %vm31_vm0, %v75_v27 }
 0x14f   :  { %v76_v29 = vadd.f32 %v97_v23, %v67_v28 }
 0x151   :  { %78 = vst.msk [vmem:[#allocation5 + $0x8] sm:$0xff] %vm31_vm0, %v76_v29 }
 0x152   :  { %139 = shalt.err (!%p136_p12)
}
 0x153   :  { %s140_s5 = scalar_lea.hbm %s223_s3, 256 }
 0x154   :  { %p141_p13 = scmp.ne.s32.totalorder %s223_s3, %s140_s5  ;;  %p144_p0 = scmp.lt.u32.totalorder %s140_s5, %s223_s3 }
 0x156   :  { %p146_p1 = pnand %p144_p0, %p141_p13 }
 0x158   :  { %149 = shalt.err (!%p146_p1)
}
 0x159   :  { %90 = dma.vmem_to_hbm [thread:$0]  %s85_s30, 256, %s223_s3, [#allocation4], %s155_s22, %s155_s22, %s156_s23  }
 0x15a   :  { %152 = dma.done.wait [#allocation4], 256  }
 0x15b   :  { %153 = vsyncadd [#allocation4], 4294967040 }
 0x15c   :  { %94 = vsyncpa [#allocation3], 1 }
 0x15d   :  { %95 = vsyncpa [#allocation4], 1 }

</bundles_post_ra>
